<compile_context>
chip_gen: v7x
topology: tpu7x:2x2x1
jax: 0.10.0
libtpu: 0.0.40
codegen_flags: <defaults>
</compile_context>

<pallas_src>
import numpy as np

import jax
import jax.numpy as jnp
from jax.experimental import pallas as pl
from jax.experimental.pallas import tpu as pltpu


_SEQ_TILE_CAP = 512  # rows per seq tile (multiple of 8); ~85% of HBM roofline for mem-bound copies


def _round_up(x, m):
    return ((x + m - 1) // m) * m


# ----------------------------- kernel -----------------------------

def pos_enc_kernel(len_ref, table_ref, out_ref):
    """len_ref: SMEM (B,) int32 (scalar prefetch); table_ref: VMEM (TS, D) rows for
    positions tile_start+1 .. tile_start+TS; out_ref: VMEM (TS, D) (batch dim squeezed)."""
    j = pl.program_id(0)            # seq tile index
    b = pl.program_id(1)            # batch index (innermost -> table tile reused, no re-DMA)
    ts = out_ref.shape[0]
    ln = len_ref[b]                 # scalar read from SMEM
    tile_start = j * ts

    @pl.when(ln <= tile_start)      # tile entirely past this row's length -> pure zero write
    def _():
        out_ref[...] = jnp.zeros_like(out_ref)

    @pl.when(ln > tile_start)
    def _():
        # global output row t is valid iff t < ln; row t maps to table row t (positions 1..)
        t = jax.lax.broadcasted_iota(jnp.int32, (ts, 1), 0) + tile_start
        out_ref[...] = jnp.where(t < ln, table_ref[...], 0.0).astype(out_ref.dtype)


# ----------------------------- wrapper -----------------------------

def pos_encoding(input_len, table_body, max_len):
    """input_len: (B,) int lengths (device array, stays dynamic);
    table_body: (R, D) table rows for positions 1..R (pad row already dropped,
                R a multiple of 8, zero-padded);
    max_len: STATIC python int == max(input_len) (resolved once by the caller).
    Returns (B, max_len, D), matching the PyTorch module."""
    input_len = jnp.asarray(input_len, jnp.int32)
    b = input_len.shape[0]
    n_rows, d = table_body.shape
    max_len = int(max_len)
    assert 1 <= max_len <= n_rows, "max_len must be in [1, table rows]"
    assert n_rows % 8 == 0, "table_body rows must be padded to a multiple of 8 at build time"

    padded_len = _round_up(max_len, 8)            # (8,128)-aligned stores (full-width vst)
    ts = min(padded_len, _SEQ_TILE_CAP)
    num_seq_tiles = pl.cdiv(padded_len, ts)

    grid_spec = pltpu.PrefetchScalarGridSpec(
        num_scalar_prefetch=1,                    # input_len -> SMEM, passed to index_maps
        grid=(num_seq_tiles, b),                  # batch innermost: table tile fetched once per seq tile
        in_specs=[
            pl.BlockSpec((ts, d), lambda j, bb, lens: (j, 0)),       # table tile, independent of b
        ],
        out_specs=pl.BlockSpec((None, ts, d), lambda j, bb, lens: (bb, j, 0)),
    )

    out = pl.pallas_call(
        pos_enc_kernel,
        out_shape=jax.ShapeDtypeStruct((b, padded_len, d), table_body.dtype),
        grid_spec=grid_spec,
        compiler_params=pltpu.CompilerParams(
            dimension_semantics=("parallel", "parallel"),   # v7x: shard grid across both TCs
            vmem_limit_bytes=32 * 1024 * 1024,
        ),
    )(input_len, table_body)

    if padded_len != max_len:
        # exact PyTorch output shape; tail rows are already zero so this is a cheap trim
        out = out[:, :max_len, :]
    return out


# ----------------------------- table init (matches PyTorch __init__) -----------------------------

def build_pos_enc_table_np(max_seq_len, d_word_vec):
    """Full table, identical to the PyTorch module: row 0 = zero pad, row p>=1 = sinusoid(pos=p-1)."""
    pos = np.arange(max_seq_len, dtype=np.float64)[:, None]
    j = np.arange(d_word_vec)[None, :]
    angle = pos / np.power(10000.0, 2.0 * (j // 2) / d_word_vec)
    pe = np.array(angle)
    pe[:, 0::2] = np.sin(angle[:, 0::2])
    pe[:, 1::2] = np.cos(angle[:, 1::2])
    pad_row = np.zeros((1, d_word_vec))
    return np.concatenate([pad_row, pe], axis=0).astype(np.float32)   # (max_seq_len + 1, D)


def build_pos_enc_body(max_seq_len, d_word_vec):
    """Kernel-side table: pad row dropped ONCE at build time, rows zero-padded to a multiple of 8."""
    full = build_pos_enc_table_np(max_seq_len, d_word_vec)
    body = full[1:]                                                    # row t = encoding of position t
    rows = _round_up(body.shape[0], 8)
    if rows != body.shape[0]:
        body = np.concatenate(
            [body, np.zeros((rows - body.shape[0], d_word_vec), np.float32)], axis=0)
    return jnp.asarray(body)


# ----------------------------- main -----------------------------

if __name__ == "__main__":
    max_seq_len, d_word_vec, batch = 16, 128, 3

    key = jax.random.PRNGKey(0)
    input_len = jax.random.randint(key, (batch,), 1, max_seq_len + 1, dtype=jnp.int32)

    # static max_len resolved ONCE at setup (not inside the kernel wrapper / any jit)
    lens_np = np.asarray(jax.device_get(input_len))
    max_len = int(lens_np.max())

    table_full = build_pos_enc_table_np(max_seq_len, d_word_vec)       # PyTorch-equivalent table
    table_body = build_pos_enc_body(max_seq_len, d_word_vec)           # kernel-side view

    out = pos_encoding(input_len, table_body, max_len)
    out = jax.block_until_ready(out)

    # ---- reference check (numpy mirror of the PyTorch forward) ----
    ref = np.zeros((batch, max_len, d_word_vec), np.float32)
    for i, ln in enumerate(lens_np):
        ref[i, :ln] = table_full[1:ln + 1]

    assert out.shape == (batch, max_len, d_word_vec)
    np.testing.assert_allclose(np.asarray(jax.device_get(out)), ref, rtol=1e-6, atol=1e-6)

    print("KERNEL_OK")
</pallas_src>

<mosaic_0001>
module attributes {stable_mosaic.version = 11 : i64} {
  func.func @pos_enc_kernel(%arg0: i32, %arg1: i32, %arg2: memref<3xi32, #tpu.memory_space<smem>>, %arg3: memref<16x128xf32, #tpu.memory_space<vmem>>, %arg4: memref<1x16x128xf32, #tpu.memory_space<vmem>>) attributes {dimension_semantics = [#tpu.dimension_semantics<parallel>, #tpu.dimension_semantics<parallel>], iteration_bounds = array<i64: 1, 3>, scalar_prefetch = 1 : i64, scratch_operands = 0 : i64, tpu.core_type = #tpu.core_type<tc>, window_params = [{transform_indices = @transform_0, window_bounds = array<i64: 16, 128>}, {transform_indices = @transform_1, window_bounds = array<i64: 1, 16, 128>}]} {
    %0 = arith.index_cast %arg1 : i32 to index
    %1 = memref.load %arg2[%0] : memref<3xi32, #tpu.memory_space<smem>>
    %c16_i32 = arith.constant 16 : i32
    %2 = arith.muli %arg0, %c16_i32 : i32
    %3 = arith.cmpi sle, %1, %2 : i32
    %4 = arith.extui %3 : i1 to i32
    %c0_i32 = arith.constant 0 : i32
    %5 = arith.cmpi ne, %4, %c0_i32 : i32
    scf.if %5 {
      %cst = arith.constant 0.000000e+00 : f32
      %9 = vector.broadcast %cst : f32 to vector<16x128xf32>
      %c0 = arith.constant 0 : index
      %c0_1 = arith.constant 0 : index
      %c0_2 = arith.constant 0 : index
      %10 = vector.load %arg4[%c0, %c0_1, %c0_2] : memref<1x16x128xf32, #tpu.memory_space<vmem>>, vector<1x16x128xf32>
      %11 = vector.shape_cast %10 : vector<1x16x128xf32> to vector<16x128xf32>
      %12 = vector.shape_cast %9 : vector<16x128xf32> to vector<1x16x128xf32>
      tpu.vector_store %arg4[%c0, %c0_1, %c0_2], %12 {strides = array<i32>} : memref<1x16x128xf32, #tpu.memory_space<vmem>>, vector<1x16x128xf32>,
    } else {
    }
    %6 = arith.cmpi sgt, %1, %2 : i32
    %7 = arith.extui %6 : i1 to i32
    %c0_i32_0 = arith.constant 0 : i32
    %8 = arith.cmpi ne, %7, %c0_i32_0 : i32
    scf.if %8 {
      %9 = tpu.iota {dimensions = array<i32: 0>} : vector<16x1xi32>
      %10 = vector.broadcast %2 : i32 to vector<16x1xi32>
      %11 = arith.addi %9, %10 : vector<16x1xi32>
      %12 = vector.broadcast %1 : i32 to vector<16x1xi32>
      %13 = arith.cmpi slt, %11, %12 : vector<16x1xi32>
      %c0 = arith.constant 0 : index
      %c0_1 = arith.constant 0 : index
      %14 = vector.load %arg3[%c0, %c0_1] : memref<16x128xf32, #tpu.memory_space<vmem>>, vector<16x128xf32>
      %cst = arith.constant 0.000000e+00 : f32
      %15 = vector.shape_cast %13 : vector<16x1xi1> to vector<16x1xi1>
      %16 = vector.broadcast %15 : vector<16x1xi1> to vector<16x128xi1>
      %17 = vector.broadcast %cst : f32 to vector<16x128xf32>
      %18 = arith.select %16, %14, %17 : vector<16x128xi1>, vector<16x128xf32>
      %c0_2 = arith.constant 0 : index
      %c0_3 = arith.constant 0 : index
      %c0_4 = arith.constant 0 : index
      %19 = vector.load %arg4[%c0_2, %c0_3, %c0_4] : memref<1x16x128xf32, #tpu.memory_space<vmem>>, vector<1x16x128xf32>
      %20 = vector.shape_cast %19 : vector<1x16x128xf32> to vector<16x128xf32>
      %21 = vector.shape_cast %18 : vector<16x128xf32> to vector<1x16x128xf32>
      tpu.vector_store %arg4[%c0_2, %c0_3, %c0_4], %21 {strides = array<i32>} : memref<1x16x128xf32, #tpu.memory_space<vmem>>, vector<1x16x128xf32>,
    } else {
    }
    return
  }
  func.func @transform_0(%arg0: i32, %arg1: i32, %arg2: memref<3xi32, #tpu.memory_space<smem>>) -> (i32, i32) {
    %c0_i32 = arith.constant 0 : i32
    %c0_i32_0 = arith.constant 0 : i32
    return %arg0, %c0_i32 : i32, i32
  }
  func.func @transform_1(%arg0: i32, %arg1: i32, %arg2: memref<3xi32, #tpu.memory_space<smem>>) -> (i32, i32, i32) {
    %c0_i32 = arith.constant 0 : i32
    %c0_i32_0 = arith.constant 0 : i32
    return %arg1, %arg0, %c0_i32 : i32, i32, i32
  }
}

</mosaic_0001>

<bundles_post_ra>
// kernel: tpu_custom_call.1
= control target key start
LH: loop header
LB: loop body
LE: loop exit
PB: predicated region body
PF: predicated region fallthrough
CT: control target
= control target key end

     0   :  { %s656_s0 = inlined_call_operand.hbm [shape: s32[3], index: 0, kind: input, shape index: {}]   ;;  %s657_s1 = inlined_call_operand.hbm [shape: f32[16,128], index: 1, kind: input, shape index: {}]   ;;  %s658_s2 = inlined_call_operand.hbm [shape: f32[3,16,128], index: 2, kind: output, shape index: {}]  }
   0x1   :  { %s348_s11 = scalar_lea.hbm %s656_s0, 16 }
   0x2   :  { %p349_p0 = scmp.ne.s32.totalorder %s656_s0, %s348_s11  ;;  %p352_p1 = scmp.lt.u32.totalorder %s348_s11, %s656_s0 }
   0x4   :  { %p354_p2 = pnand %p352_p1, %p349_p0 }
   0x6   :  { %357 = shalt.err (!%p354_p2)  }
   0x7   :  { %s472_s16 = smov [#allocation3]  }
   0x8   :  { %8 = dma.hbm_to_smem %s656_s0, 16, %s472_s16, [#allocation2] }
   0x9   :  { %438 = dma.done.wait [#allocation2], 16 }
   0xa   :  { %439 = vsyncadd [#allocation2], 4294967280 }
   0xb   :  { %10 = sfence }
   0xc   :  { %11 = vsyncpa [#allocation5], 0 }
   0xd   :  { %12 = vsyncpa [#allocation6], 0 }
   0xe   :  { %14 = vsyncpa [#allocation6 + $0x1], 0  ;;  %s507_s19 = smov 0   ;;  %s509_s20 = smov 0  }
   0xf   :  { %s511_s21 = smov 0   ;;  %s513_s22 = smov 0  }
  0x10   :  { %s515_s23 = smov 0   ;;  %s517_s24 = smov 0  }
  0x11 LB: > { %s261_s0 = sadd.s32 4294967295, %s470_s24   ;;  %s262_s25 = sadd.s32 4294967294, %s470_s24   ;;  %s470_s24 = sphi %s517_s24, %s20_s24   ;;  %s466_s23 = sphi %s515_s23, %s676_s23   ;;  %s462_s22 = sphi %s513_s22, %s675_s22   ;;  %s458_s21 = sphi %s511_s21, %s674_s21   ;;  %s454_s20 = sphi %s509_s20, %s673_s20   ;;  %s450_s19 = sphi %s507_s19, %s672_s19  }
  0x12   : > { %s29_s26 = sadd.s32 1, %s466_s23  ;;  %s67_s27 = sadd.s32 1, %s458_s21 }
  0x13   : > { %p30_p3 = scmp.ge.s32.totalorder %s29_s26, 3  ;;  %p77_p4 = scmp.ne.s32.totalorder %s458_s21, %s454_s20 }
  0x14   : > { %p78_p5 = scmp.eq.s32.totalorder %s261_s0, 2  ;;  %p83_p6 = scmp.ne.s32.totalorder %s454_s20, %s450_s19 }
  0x15   : > { %s678_s26 = smov (%p30_p3, %s29_s26), 0  ;;  %p84_p8 = scmp.eq.s32.totalorder %s262_s25, 2 }
  0x16   : > { %p547_p7 = por %p78_p5, %p77_p4  ;;  %s62_s29 = ssub.s32 %s466_s23, %s678_s26 }
  0x17   : > { %p263_p9 = scmp.ge.s32.totalorder %s470_s24, 1  ;;  %p65_p10 = scmp.eq.s32.totalorder %s62_s29, 0 }
  0x18   : > { %s663_s28 = scalar_select %p547_p7, 1, 0 }
  0x19   : > { %p554_p11 = por %p84_p8, %p83_p6  ;;  %p91_p12 = scmp.lt.s32.totalorder %s470_s24, 4 }
  0x1a   : > { %s560_s3 = scalar_select %p65_p10, %s458_s21, %s67_s27  }
  0x1b   : > { %s664_s30 = scalar_select %p554_p11, 1, 0 }
  0x1c   : > { %p562_p13 = pnand %p263_p9, %p91_p12  ;;  %p566_p0 = scmp.eq.s32.totalorder %s261_s0, 0 }
  0x1d   : > { %s473_s6 = smov [#allocation4]   ;;  %s358_s11 = scalar_lea.hbm %s657_s1, 256 }
  0x1e   : > { %s665_s4 = scalar_select %p562_p13, 1, 0 }
  0x1f   : > { %s666_s5 = scalar_select %p566_p0, 1, 0 }
  0x20   : > { %p282_p1 = pneg %p562_p13  ;;  %s106_s7 = sshll.u32 %s473_s6, 4  ;;  %s107_s7 = int_to_ptr.vmem [resolvable:$true] %s106_s7 }
  0x21   : > { %p359_p3 = scmp.ne.s32.totalorder %s657_s1, %s358_s11  ;;  %p365_p8 = scmp.lt.u32.totalorder %s358_s11, %s657_s1 }
  0x22   : > { %p574_p2 = pnand %p566_p0, %p282_p1 }
  0x24   : > { %p360_p4 = pneg %p574_p2 }
  0x26   : > { %p361_p5 = pnand %p360_p4, %p359_p3 }
  0x28   : > { %p362_p6 = pneg %p361_p5 }
  0x2a   : > { %p367_p9 = pnand %p365_p8, %p362_p6 }
  0x2c   : > { %370 = shalt.err (!%p367_p9)
}
  0x2d   : > { %s371_s16 = scalar_lea.vmem %s107_s7, 256  ;;  %p379_p11 = scmp.lt.s32.totalorder %s107_s7, %s107_s7 }
  0x2e   : > { %p372_p10 = scmp.ne.s32.totalorder %s107_s7, %s371_s16  ;;  %p380_p7 = scmp.lt.s32.totalorder %s371_s16, %s371_s16 }
  0x30   : > { %p374_p12 = pnand %p372_p10, %p360_p4  ;;  %p381_p0 = por %p380_p7, %p379_p11 }
  0x32   : > { %p375_p1 = pneg %p374_p12 }
  0x34   : > { %p382_p13 = pnand %p381_p0, %p375_p1 }
  0x36   : > { %385 = shalt.err (!%p382_p13)
}
  0x37   : > { %s474_s17 = smov 128   ;;  %s475_s18 = smov 8  }
  0x38   : > { %285 = dma.hbm_to_vmem [thread:$0]  (!%p574_p2), %s657_s1, 256, %s107_s7, [#allocation5], %s474_s17, %s474_s17, %s475_s18  }
  0x39   : > { %p668_p3 = scmp.ne.s32.totalorder %s665_s4, 0 }
  0x3a   : > { %p669_p5 = scmp.ne.s32.totalorder (!%p668_p3), %s666_s5, 0 }
  0x3b   : > { %122 = sbr.rel (%p668_p3) target bundleno = 118 (0x76), region = 24 }
  0x42   : > { %441 = dma.done.wait (%p669_p5), [#allocation5], 256  }
  0x43   : > { %443 = vsyncadd (%p669_p5), [#allocation5], 4294967040  ;;  %s134_s27 = sand.u32 1, %s454_s20   ;;  %s139_s29 = sld [smem:[#allocation3 + %s462_s22]] }
  0x44   : > { %s267_s6 = sshll.u32 %s134_s27, 4 }
  0x45   : > { %s136_s9 = scalar_lea.vmem [#allocation7], %s267_s6 }
  0x49   : > { %p268_p7 = scmp.gt.s32.totalorder %s139_s29, 0 }
  0x4a   : > { %v476_v0 = vmov (!%p268_p7), 0.0  }
  0x4b   : > { %144 = sbr.rel (%p268_p7) target bundleno = 82 (0x52), region = 32  ;;  %145 = vst [vmem:[%s136_s9] sm:$0xff] (!%p268_p7), %v476_v0  ;;  %146 = vst [vmem:[%s136_s9 + $0x8] sm:$0xff] (!%p268_p7), %v476_v0 }
  0x52 PF: > { %p269_p11 = scmp.le.s32.totalorder %s139_s29, 0 }
  0x53   : > { %v151_v1 = vlaneseq (!%p269_p11)  ;;  %v157_v2 = vstv (!%p269_p11), %s139_s29  ;;  %v160_v4 = vld [vmem:[#allocation4] sm:$0xff] (!%p269_p11)  ;;  %v161_v6 = vld [vmem:[#allocation4 + $0x8] sm:$0xff] (!%p269_p11) }
  0x54   : > { %150 = sbr.rel (%p269_p11) target bundleno = 92 (0x5c), region = 36 }
  0x55   : > { %v152_v3 = vshrl.u32 (!%p269_p11), %v151_v1, 7 }
  0x57   : > { %vm158_vm0 = vcmp.lt.s32.totalorder (!%p269_p11), %v152_v3, %v157_v2  ;;  %v153_v5 = vadd.s32 (!%p269_p11), 8, %v152_v3 }
  0x58   : > { %v166_v7 = vsel (!%p269_p11), %vm158_vm0, %v160_v4, 0.0 }
  0x59   : > { %168 = vst [vmem:[%s136_s9] sm:$0xff] (!%p269_p11), %v166_v7  ;;  %vm159_vm1 = vcmp.lt.s32.totalorder (!%p269_p11), %v153_v5, %v157_v2 }
  0x5a   : > { %v167_v8 = vsel (!%p269_p11), %vm159_vm1, %v161_v6, 0.0 }
  0x5b   : > { %169 = vst [vmem:[%s136_s9 + $0x8] sm:$0xff] %v167_v8 }
  0x5c PF: > { %s275_s4 = sshll.u32 %s462_s22, 8  ;;  %s186_s10 = sshll.u32 %s136_s9, 4  ;;  %s608_s10 = int_to_ptr.vmem [resolvable:$true] %s186_s10 }
  0x5d   : > { %s606_s8 = scalar_lea.hbm %s658_s2, %s275_s4  ;;  %s610_s11 = scalar_lea.sflag [#allocation6], %s134_s27 }
  0x5e   : > { %s386_s12 = scalar_lea.vmem %s608_s10, 256  ;;  %p670_p0 = scmp.ne.s32.totalorder %s663_s28, 0 }
  0x5f   : > { %p387_p13 = scmp.ne.s32.totalorder %s608_s10, %s386_s12  ;;  %s477_s13 = smov [#allocation7]  }
  0x60   : > { %s390_s22 = sshll.u32 %s477_s13, 4  ;;  %s391_s22 = int_to_ptr.vmem [resolvable:$false] %s390_s22 }
  0x61   : > { %p388_p2 = pnand %p387_p13, %p670_p0  ;;  %s392_s14 = scalar_lea.vmem %s391_s22, 512 }
  0x62   : > { %p393_p6 = scmp.lt.s32.totalorder %s608_s10, %s391_s22  ;;  %p394_p8 = scmp.lt.s32.totalorder %s392_s14, %s386_s12 }
  0x63   : > { %p389_p4 = pneg %p388_p2 }
  0x64   : > { %p395_p9 = por %p394_p8, %p393_p6 }
  0x66   : > { %p396_p10 = pnand %p395_p9, %p389_p4 }
  0x68   : > { %399 = shalt.err (!%p396_p10)
}
  0x69   : > { %s400_s15 = scalar_lea.hbm %s606_s8, 256  ;;  %s404_s18 = scalar_lea.hbm %s658_s2, 768 }
  0x6a   : > { %p401_p12 = scmp.ne.s32.totalorder %s606_s8, %s400_s15  ;;  %p405_p5 = scmp.lt.u32.totalorder %s606_s8, %s658_s2 }
  0x6b   : > { %p406_p7 = scmp.lt.u32.totalorder %s404_s18, %s400_s15  ;;  %p408_p13 = scmp.lt.u32.totalorder %s400_s15, %s606_s8 }
  0x6c   : > { %p402_p1 = pnand %p401_p12, %p670_p0 }
  0x6d   : > { %p407_p11 = por %p406_p7, %p405_p5 }
  0x6e   : > { %p403_p3 = pneg %p402_p1 }
  0x6f   : > { %p409_p2 = por %p408_p13, %p407_p11 }
  0x71   : > { %p410_p4 = pnand %p409_p2, %p403_p3 }
  0x73   : > { %413 = shalt.err (!%p410_p4)
}
  0x74   : > { %s478_s27 = smov 128   ;;  %s479_s29 = smov 8  }
  0x75   : > { %280 = dma.vmem_to_hbm [thread:$0]  (%p670_p0), %s608_s10, 256, %s606_s8, %s610_s11, %s478_s27, %s478_s27, %s479_s29  }
  0x76 PF: > { %p292_p6 = scmp.ge.s32.totalorder %s470_s24, 2  ;;  %s201_s6 = sand.u32 1, %s450_s19  }
  0x77   : > { %p671_p8 = scmp.ne.s32.totalorder %s664_s30, 0  ;;  %s202_s9 = scalar_lea.sflag [#allocation6], %s201_s6 }
  0x79   : > { %p287_p9 = pnand %p292_p6, %p671_p8 }
  0x7b   : > { %445 = dma.done.wait (!%p287_p9), %s202_s9, 256  }
  0x7c   : > { %447 = vsyncadd (!%p287_p9), %s202_s9, 4294967040  ;;  %s20_s24 = sadd.s32 1, %s470_s24   ;;  %s672_s19 = smov %s454_s20 }
  0x7d   : > { %p17_p10 = scmp.ge.s32.totalorder %s20_s24, 5   ;;  %s673_s20 = smov %s458_s21 }
  0x7e   : > { %s674_s21 = smov %s560_s3  ;;  %s675_s22 = smov %s466_s23 }
  0x7f   : > { %s676_s23 = smov %s678_s26  ;;  %19 = sbr.rel (!%p17_p10) target bundleno = 17 (0x11), region = 70 }
  0x86   :  { %207 = vsyncpa [#allocation5], 1 }
  0x87   :  { %209 = vsyncpa [#allocation5 + $0x1], 1 }
  0x88   :  { %210 = vsyncpa [#allocation6], 1 }
  0x89   :  { %212 = vsyncpa [#allocation6 + $0x1], 1 }

</bundles_post_ra>
